<compile_context>
chip_gen: v7x
topology: tpu7x:2x2x1
jax: 0.10.0
libtpu: 0.0.40
codegen_flags: <defaults>
</compile_context>

<pallas_src>
import functools

import jax
import jax.numpy as jnp
from jax.experimental import pallas as pl
from jax.experimental.pallas import tpu as pltpu


def mlp_kernel(x_ref, w1_ref, b1_ref, w2_ref, b2_ref, w3_ref, b3_ref, o_ref):
    # Layer 1: Linear(input_dim, 10) + ReLU   (bf16 dot, f32 accumulate)
    h = jnp.dot(x_ref[...], w1_ref[...], preferred_element_type=jnp.float32)
    h = jnp.maximum(h + b1_ref[...], 0.0)
    # Layer 2: Linear(10, 5) + ReLU
    h = jnp.dot(h.astype(w2_ref.dtype), w2_ref[...],
                preferred_element_type=jnp.float32)
    h = jnp.maximum(h + b2_ref[...], 0.0)
    # Layer 3: Linear(5, out_pad) + Sigmoid   (out_pad = out_dim padded to 128)
    h = jnp.dot(h.astype(w3_ref.dtype), w3_ref[...],
                preferred_element_type=jnp.float32)
    h = h + b3_ref[...]
    denom = 1.0 + jnp.exp(-h)                      # exp -> EUP
    o_ref[...] = pl.reciprocal(denom, approx=False).astype(o_ref.dtype)


def _pick_batch_tile(batch):
    # Largest "nice" tile (multiple of 8, preferably a multiple of 128/256)
    # that divides the batch; keeps the grid >= 2 steps whenever batch allows.
    for cand in (2048, 1024, 512, 256, 128, 64, 32, 16, 8):
        if batch % cand == 0:
            return cand
    return batch


def mlp_forward(x, params, *, batch_tile=None, dot_dtype=jnp.bfloat16):
    """Run the fused MLP kernel. x: (B, input_dim) float32 (or bf16)."""
    w1, b1, w2, b2, w3, b3 = params
    B, in_dim = x.shape
    out_dim = w3.shape[1]

    # Lane-dense output: pad the last layer's columns up to a multiple of 128.
    out_pad = max(128, -(-out_dim // 128) * 128)
    pad_cols = out_pad - out_dim
    w3p = jnp.pad(w3, ((0, 0), (0, pad_cols)))
    b3p = jnp.pad(b3, ((0, 0), (0, pad_cols)))

    # Cast the matmul operands to bf16 (HBM bytes / MXU-native path); keep the
    # biases (and all elementwise work inside the kernel) in f32.
    xc = x.astype(dot_dtype)
    w1c, w2c, w3c = (w.astype(dot_dtype) for w in (w1, w2, w3p))
    b1f, b2f, b3f = (b.astype(jnp.float32) for b in (b1, b2, b3p))

    tb = _pick_batch_tile(B) if batch_tile is None else batch_tile
    assert B % tb == 0, f"batch {B} must be divisible by batch_tile {tb}"
    grid = (B // tb,)

    rep = lambda i: (0, 0)  # weights/biases: same block every grid step
    out_padded = pl.pallas_call(
        mlp_kernel,
        out_shape=jax.ShapeDtypeStruct((B, out_pad), jnp.float32),
        grid_spec=pltpu.PrefetchScalarGridSpec(
            num_scalar_prefetch=0,
            grid=grid,
            in_specs=[
                pl.BlockSpec((tb, in_dim), lambda i: (i, 0)),   # x tile
                pl.BlockSpec(w1c.shape, rep),
                pl.BlockSpec(b1f.shape, rep),
                pl.BlockSpec(w2c.shape, rep),
                pl.BlockSpec(b2f.shape, rep),
                pl.BlockSpec(w3c.shape, rep),
                pl.BlockSpec(b3f.shape, rep),
            ],
            out_specs=pl.BlockSpec((tb, out_pad), lambda i: (i, 0)),
        ),
        compiler_params=pltpu.CompilerParams(
            dimension_semantics=("parallel",),       # batch axis -> megacore on v7x
            vmem_limit_bytes=32 * 1024 * 1024,       # safe on v7x (64 MiB phys)
        ),
    )(xc, w1c, b1f, w2c, b2f, w3c, b3f)

    return out_padded[:, :out_dim]


def init_params(key, input_dim, output_dim):
    """Deterministic init mirroring nn.Linear's U(-1/sqrt(fan_in), 1/sqrt(fan_in))."""
    dims = [(input_dim, 10), (10, 5), (5, output_dim)]
    params = []
    for (fan_in, fan_out) in dims:
        key, kw, kb = jax.random.split(key, 3)
        bound = 1.0 / jnp.sqrt(fan_in)
        w = jax.random.uniform(kw, (fan_in, fan_out), jnp.float32, -bound, bound)
        b = jax.random.uniform(kb, (1, fan_out), jnp.float32, -bound, bound)
        params += [w, b]
    return params


def mlp_reference(x, params, dot_dtype=jnp.bfloat16):
    """Pure-JAX reference with the same bf16-input / f32-accumulate numerics."""
    w1, b1, w2, b2, w3, b3 = params
    c = lambda a: a.astype(dot_dtype)
    h = jnp.dot(c(x), c(w1), preferred_element_type=jnp.float32) + b1
    h = jnp.maximum(h, 0.0)
    h = jnp.dot(c(h), c(w2), preferred_element_type=jnp.float32) + b2
    h = jnp.maximum(h, 0.0)
    z = jnp.dot(c(h), c(w3), preferred_element_type=jnp.float32) + b3
    return 1.0 / (1.0 + jnp.exp(-z))


if __name__ == "__main__":
    key = jax.random.PRNGKey(0)
    input_dim, output_dim = 16, 4
    batch = 256            # small, but enough for a 2-step grid (tile=128)

    kx, kp = jax.random.split(key)
    x = jax.random.normal(kx, (batch, input_dim), jnp.float32)
    params = init_params(kp, input_dim, output_dim)

    fwd = jax.jit(functools.partial(mlp_forward, batch_tile=128))
    out = fwd(x, params)
    jax.block_until_ready(out)

    ref = mlp_reference(x, params)
    assert out.shape == (batch, output_dim), out.shape
    assert jnp.allclose(out, ref, atol=1e-4, rtol=1e-4), float(
        jnp.max(jnp.abs(out - ref)))

    print("KERNEL_OK")
</pallas_src>

<mosaic_0001>
module attributes {stable_mosaic.version = 11 : i64} {
  func.func @mlp_kernel(%arg0: i32, %arg1: memref<128x16xbf16, #tpu.memory_space<vmem>>, %arg2: memref<16x10xbf16, #tpu.memory_space<vmem>>, %arg3: memref<1x10xf32, #tpu.memory_space<vmem>>, %arg4: memref<10x5xbf16, #tpu.memory_space<vmem>>, %arg5: memref<1x5xf32, #tpu.memory_space<vmem>>, %arg6: memref<5x128xbf16, #tpu.memory_space<vmem>>, %arg7: memref<1x128xf32, #tpu.memory_space<vmem>>, %arg8: memref<128x128xf32, #tpu.memory_space<vmem>>) attributes {dimension_semantics = [#tpu.dimension_semantics<parallel>], iteration_bounds = array<i64: 2>, scalar_prefetch = 0 : i64, scratch_operands = 0 : i64, tpu.core_type = #tpu.core_type<tc>, window_params = [{transform_indices = @transform_0, window_bounds = array<i64: 128, 16>}, {pipeline_mode = #tpu.pipeline_mode<synchronous>, transform_indices = @transform_1, window_bounds = array<i64: 16, 10>}, {pipeline_mode = #tpu.pipeline_mode<synchronous>, transform_indices = @transform_2, window_bounds = array<i64: 1, 10>}, {pipeline_mode = #tpu.pipeline_mode<synchronous>, transform_indices = @transform_3, window_bounds = array<i64: 10, 5>}, {pipeline_mode = #tpu.pipeline_mode<synchronous>, transform_indices = @transform_4, window_bounds = array<i64: 1, 5>}, {pipeline_mode = #tpu.pipeline_mode<synchronous>, transform_indices = @transform_5, window_bounds = array<i64: 5, 128>}, {pipeline_mode = #tpu.pipeline_mode<synchronous>, transform_indices = @transform_6, window_bounds = array<i64: 1, 128>}, {transform_indices = @transform_7, window_bounds = array<i64: 128, 128>}]} {
    %c0 = arith.constant 0 : index
    %c0_0 = arith.constant 0 : index
    %0 = vector.load %arg1[%c0, %c0_0] : memref<128x16xbf16, #tpu.memory_space<vmem>>, vector<128x16xbf16>
    %c0_1 = arith.constant 0 : index
    %c0_2 = arith.constant 0 : index
    %1 = vector.load %arg2[%c0_1, %c0_2] : memref<16x10xbf16, #tpu.memory_space<vmem>>, vector<16x10xbf16>
    %cst = arith.constant dense<0.000000e+00> : vector<128x10xf32>
    %2 = tpu.matmul %0, %1, %cst {dimension_numbers = #tpu.dot_dimension_numbers<[1], [0], [0], [1], [0, 0, 1, 1], [], []>} : vector<128x16xbf16>, vector<16x10xbf16>, vector<128x10xf32> -> vector<128x10xf32>
    %c0_3 = arith.constant 0 : index
    %c0_4 = arith.constant 0 : index
    %3 = vector.load %arg3[%c0_3, %c0_4] : memref<1x10xf32, #tpu.memory_space<vmem>>, vector<1x10xf32>
    %4 = vector.broadcast %3 : vector<1x10xf32> to vector<128x10xf32>
    %5 = arith.addf %2, %4 : vector<128x10xf32>
    %cst_5 = arith.constant 0.000000e+00 : f32
    %6 = vector.broadcast %cst_5 : f32 to vector<128x10xf32>
    %7 = arith.maximumf %5, %6 : vector<128x10xf32>
    %8 = arith.truncf %7 : vector<128x10xf32> to vector<128x10xbf16>
    %c0_6 = arith.constant 0 : index
    %c0_7 = arith.constant 0 : index
    %9 = vector.load %arg4[%c0_6, %c0_7] : memref<10x5xbf16, #tpu.memory_space<vmem>>, vector<10x5xbf16>
    %cst_8 = arith.constant dense<0.000000e+00> : vector<128x5xf32>
    %10 = tpu.matmul %8, %9, %cst_8 {dimension_numbers = #tpu.dot_dimension_numbers<[1], [0], [0], [1], [0, 0, 1, 1], [], []>} : vector<128x10xbf16>, vector<10x5xbf16>, vector<128x5xf32> -> vector<128x5xf32>
    %c0_9 = arith.constant 0 : index
    %c0_10 = arith.constant 0 : index
    %11 = vector.load %arg5[%c0_9, %c0_10] : memref<1x5xf32, #tpu.memory_space<vmem>>, vector<1x5xf32>
    %12 = vector.broadcast %11 : vector<1x5xf32> to vector<128x5xf32>
    %13 = arith.addf %10, %12 : vector<128x5xf32>
    %cst_11 = arith.constant 0.000000e+00 : f32
    %14 = vector.broadcast %cst_11 : f32 to vector<128x5xf32>
    %15 = arith.maximumf %13, %14 : vector<128x5xf32>
    %16 = arith.truncf %15 : vector<128x5xf32> to vector<128x5xbf16>
    %c0_12 = arith.constant 0 : index
    %c0_13 = arith.constant 0 : index
    %17 = vector.load %arg6[%c0_12, %c0_13] : memref<5x128xbf16, #tpu.memory_space<vmem>>, vector<5x128xbf16>
    %cst_14 = arith.constant dense<0.000000e+00> : vector<128x128xf32>
    %18 = tpu.matmul %16, %17, %cst_14 {dimension_numbers = #tpu.dot_dimension_numbers<[1], [0], [0], [1], [0, 0, 1, 1], [], []>} : vector<128x5xbf16>, vector<5x128xbf16>, vector<128x128xf32> -> vector<128x128xf32>
    %c0_15 = arith.constant 0 : index
    %c0_16 = arith.constant 0 : index
    %19 = vector.load %arg7[%c0_15, %c0_16] : memref<1x128xf32, #tpu.memory_space<vmem>>, vector<1x128xf32>
    %20 = vector.broadcast %19 : vector<1x128xf32> to vector<128x128xf32>
    %21 = arith.addf %18, %20 : vector<128x128xf32>
    %cst_17 = arith.constant 0.000000e+00 : f32
    %22 = vector.broadcast %cst_17 : f32 to vector<128x128xf32>
    %23 = arith.subf %22, %21 : vector<128x128xf32>
    %24 = math.exp %23 : vector<128x128xf32>
    %cst_18 = arith.constant 1.000000e+00 : f32
    %25 = vector.broadcast %cst_18 : f32 to vector<128x128xf32>
    %26 = arith.addf %25, %24 : vector<128x128xf32>
    %27 = tpu.reciprocal %26 : vector<128x128xf32> -> vector<128x128xf32>
    %c0_19 = arith.constant 0 : index
    %c0_20 = arith.constant 0 : index
    %28 = vector.load %arg8[%c0_19, %c0_20] : memref<128x128xf32, #tpu.memory_space<vmem>>, vector<128x128xf32>
    tpu.vector_store %arg8[%c0_19, %c0_20], %27 {strides = array<i32>} : memref<128x128xf32, #tpu.memory_space<vmem>>, vector<128x128xf32>,
    return
  }
  func.func @transform_0(%arg0: i32) -> (i32, i32) {
    %c0_i32 = arith.constant 0 : i32
    %c0_i32_0 = arith.constant 0 : i32
    return %arg0, %c0_i32 : i32, i32
  }
  func.func @transform_1(%arg0: i32) -> (i32, i32) {
    %c0_i32 = arith.constant 0 : i32
    %c0_i32_0 = arith.constant 0 : i32
    %c0_i32_1 = arith.constant 0 : i32
    return %c0_i32, %c0_i32_0 : i32, i32
  }
  func.func @transform_2(%arg0: i32) -> (i32, i32) {
    %c0_i32 = arith.constant 0 : i32
    %c0_i32_0 = arith.constant 0 : i32
    %c0_i32_1 = arith.constant 0 : i32
    return %c0_i32, %c0_i32_0 : i32, i32
  }
  func.func @transform_3(%arg0: i32) -> (i32, i32) {
    %c0_i32 = arith.constant 0 : i32
    %c0_i32_0 = arith.constant 0 : i32
    %c0_i32_1 = arith.constant 0 : i32
    return %c0_i32, %c0_i32_0 : i32, i32
  }
  func.func @transform_4(%arg0: i32) -> (i32, i32) {
    %c0_i32 = arith.constant 0 : i32
    %c0_i32_0 = arith.constant 0 : i32
    %c0_i32_1 = arith.constant 0 : i32
    return %c0_i32, %c0_i32_0 : i32, i32
  }
  func.func @transform_5(%arg0: i32) -> (i32, i32) {
    %c0_i32 = arith.constant 0 : i32
    %c0_i32_0 = arith.constant 0 : i32
    %c0_i32_1 = arith.constant 0 : i32
    return %c0_i32, %c0_i32_0 : i32, i32
  }
  func.func @transform_6(%arg0: i32) -> (i32, i32) {
    %c0_i32 = arith.constant 0 : i32
    %c0_i32_0 = arith.constant 0 : i32
    %c0_i32_1 = arith.constant 0 : i32
    return %c0_i32, %c0_i32_0 : i32, i32
  }
  func.func @transform_7(%arg0: i32) -> (i32, i32) {
    %c0_i32 = arith.constant 0 : i32
    %c0_i32_0 = arith.constant 0 : i32
    return %arg0, %c0_i32 : i32, i32
  }
}

</mosaic_0001>

<bundles_post_ra>
// kernel: mlp_forward.1
= control target key start
LH: loop header
LB: loop body
LE: loop exit
PB: predicated region body
PF: predicated region fallthrough
CT: control target
= control target key end

     0   :  { %s1217_s24 = smov 0   ;;  %s1318_s0 = inlined_call_operand.vmem [shape: bf16[256,16], index: 0, kind: input, shape index: {}]   ;;  %s1319_s1 = inlined_call_operand.vmem [shape: bf16[16,10], index: 1, kind: input, shape index: {}]   ;;  %s1320_s2 = inlined_call_operand.vmem [shape: f32[1,10], index: 2, kind: input, shape index: {}]   ;;  %s1321_s3 = inlined_call_operand.vmem [shape: bf16[10,5], index: 3, kind: input, shape index: {}]   ;;  %s1322_s4 = inlined_call_operand.vmem [shape: f32[1,5], index: 4, kind: input, shape index: {}]   ;;  %s1323_s5 = inlined_call_operand.vmem [shape: bf16[5,128], index: 5, kind: input, shape index: {}]   ;;  %s1324_s6 = inlined_call_operand.vmem [shape: f32[1,128], index: 6, kind: input, shape index: {}]   ;;  %s1325_s7 = inlined_call_operand.vmem [shape: f32[256,128], index: 7, kind: output, shape index: {}]  }
   0x1 LB: > { %s953_s25 = sadd.s32 4294967295, %s1174_s24   ;;  %p957_p0 = scmp.ge.s32.totalorder %s1174_s24, 1  ;;  %s1174_s24 = sphi %s1217_s24, %s17_s24  }
   0x2   : > { %p238_p1 = scmp.lt.s32.totalorder %s1174_s24, 3 }
   0x4   : > { %p239_p2 = pnand %p957_p0, %p238_p1 }
   0x5   : > { %v1094_v0 = vld [vmem:[%s1319_s1] sm:$0xff] (!%p239_p2)   ;;  %s958_s28 = sshll.u32 (!%p239_p2), %s953_s25, 4  ;;  %vm539_vm0 = vcmask (!%p239_p2), 1044480   ;;  %vm354_vm1 = vcmask (!%p239_p2), 130048   ;;  %vm697_vm2 = vcmask (!%p239_p2), 1041408   ;;  %vm698_vm3 = vcmask (!%p239_p2), 1042432  }
   0x6   : > { %242 = sbr.rel (%p239_p2) target bundleno = 733 (0x2dd), region = 48  ;;  %p271_p3 = scmp.lt.s32.totalorder (!%p239_p2), %s958_s28, 31  ;;  %1028 = vmatprep.subr.bf16.mxu0 (!%p239_p2), %v1094_v0  ;;  %1082 = vmatprep.subr.bf16.mxu1 (!%p239_p2), %v1094_v0  ;;  %v1103_v1 = vld [vmem:[%s1321_s3] sm:$0x1f] (!%p239_p2)   ;;  %v1176_v12 = vmov (!%p239_p2), 65535   ;;  %vm514_vm4 = vcmask (!%p239_p2), 80896  }
   0x7   : > { %1029 = vmatpush3.bf16.msra.mxu0 (!%p239_p2), %v1094_v0  ;;  %1083 = vmatpush3.bf16.msra.mxu1 (!%p239_p2), %v1094_v0  ;;  %v541_v7 = vsel (!%p239_p2), %vm539_vm0, %v1103_v1, 0  ;;  %v664_v11 = vld [vmem:[%s1323_s5] sm:$0x7] (!%p239_p2)  ;;  %v699_v13 = vsel (!%p239_p2), %vm697_vm2, 4294967295, %v1176_v12  ;;  %vm672_vm5 = vcmask (!%p239_p2), 39936  }
   0x8   : > { %1084 = vmatprep.subr.msk.bf16.mxu1 (!%p239_p2), %vm539_vm0, %v1103_v1  ;;  %v700_v14 = vsel (!%p239_p2), %vm698_vm3, %v699_v13, 0  ;;  %v962_v16 = vld [vmem:[%s1320_s2] ss:$0 sm:$0xff] (!%p239_p2) }
   0x9   : > { %v702_v15 = vand.u32 (!%p239_p2), %v700_v14, %v664_v11 }
   0xb   : > { %1064 = vmatprep.subr.bf16.mxu0 (!%p239_p2), %v702_v15 }
   0xd   : > { %s1327_s28 = smov (!%p271_p3, %s958_s28), 31 }
   0xe   : > { %s959_s8 = sshll.u32 %s1327_s28, 2  ;;  %s961_s20 = sshll.u32 %s1327_s28, 3 }
   0xf   : > { %s274_s11 = scalar_lea.vmem %s1318_s0, %s959_s8  ;;  %s1296_s23 = scalar_lea.vmem %s1325_s7, %s961_s20 }
  0x10   : > { %v1095_v2 = vld [vmem:[%s274_s11] sm:$0xff]   ;;  %v1096_v3 = vld [vmem:[%s274_s11 + $0x8] sm:$0xff]   ;;  %v1097_v4 = vld [vmem:[%s274_s11 + $0x10] sm:$0xff]  }
  0x11   : > { %1030 = vmatprep.mubr.msk.bf16.mxu0 %vm354_vm1, %v1095_v2  ;;  %v1099_v5 = vld [vmem:[%s274_s11 + $0x20] sm:$0xff]   ;;  %v1100_v6 = vld [vmem:[%s274_s11 + $0x28] sm:$0xff]   ;;  %v1101_v8 = vld [vmem:[%s274_s11 + $0x30] sm:$0xff]  }
  0x12   : > { %1031 = vmatmul.mubr.msk.bf16.vlgmr.msra.gmra.mrb[0].mxu0 %vm354_vm1, %v1096_v3  ;;  %1038 = vmatprep.mubr.msk.bf16.mxu1 %vm354_vm1, %v1099_v5  ;;  %v1098_v9 = vld [vmem:[%s274_s11 + $0x18] sm:$0xff]  }
  0x13   : > { %1034 = vmatprep.mubr.msk.bf16.mxu0 %vm354_vm1, %v1097_v4  ;;  %1039 = vmatmul.mubr.msk.bf16.vlgmr.msra.gmra.mrb[0].mxu1 %vm354_vm1, %v1100_v6  ;;  %v1102_v10 = vld [vmem:[%s274_s11 + $0x38] sm:$0xff]  }
  0x14   : > { %1042 = vmatprep.mubr.msk.bf16.mxu1 %vm354_vm1, %v1101_v8  ;;  %1047 = vmatpush3.bf16.msra.mxu1 %v541_v7 }
  0x15   : > { %1065 = vmatpush3.bf16.msra.mxu0 %v702_v15 }
  0x1a   : > { %1035 = vmatmul.mubr.msk.bf16.gmra.mrb[4].mxu0 %vm354_vm1, %v1098_v9  ;;  %v980_v9 = vld [vmem:[%s1322_s4] ss:$0 sm:$0xff] }
  0x1b   : > { %1043 = vmatmul.mubr.msk.bf16.gmra.mrb[4].mxu1 %vm354_vm1, %v1102_v10 }
  0xe5   : > { %v1032_v17 = vpop.f32.mrb[0].mxu0 }
  0xe6   : > { %v422_v18 = vadd.f32 %v1032_v17, %v962_v16  ;;  %v413_v19 = vpop.f32.mrb[1].mxu0  ;;  %v1040_v25 = vpop.f32.mrb[0].mxu1 }
  0xe7   : > { %v414_v20 = vadd.f32 %v962_v16, %v413_v19  ;;  %v1033_v21 = vpop.f32.mrb[2].mxu0  ;;  %v454_v28 = vadd.f32 %v1040_v25, %v962_v16  ;;  %v445_v29 = vpop.f32.mrb[1].mxu1 }
  0xe8   : > { %v425_v22 = vadd.f32 %v1033_v21, %v962_v16  ;;  %v416_v23 = vpop.f32.mrb[3].mxu0  ;;  %v478_v26 = vmax.f32 %v422_v18, 0.0  ;;  %v446_v32 = vadd.f32 %v962_v16, %v445_v29  ;;  %v1041_v33 = vpop.f32.mrb[2].mxu1 }
  0xe9   : > { %v417_v24 = vadd.f32 %v962_v16, %v416_v23  ;;  %v476_v30 = vmax.f32 %v414_v20, 0.0  ;;  %v486_v35 = vmax.f32 %v454_v28, 0.0  ;;  %v457_v36 = vadd.f32 %v1041_v33, %v962_v16  ;;  %v448_v37 = vpop.f32.mrb[3].mxu1 }
  0xea   : > { %v479_v27 = vmax.f32 %v425_v22, 0.0  ;;  %v484_v40 = vmax.f32 %v446_v32, 0.0  ;;  %v449_v41 = vadd.f32 %v962_v16, %v448_v37 }
  0xeb   : > { %v477_v31 = vmax.f32 %v417_v24, 0.0  ;;  %v487_v44 = vmax.f32 %v457_v36, 0.0 }
  0xec   : > { %v493_v34 = vpack.c.bf16 %v479_v27, %v478_v26  ;;  %v485_v47 = vmax.f32 %v449_v41, 0.0 }
  0xed   : > { %v492_v38 = vpack.c.bf16 %v477_v31, %v476_v30  ;;  %v1036_v39 = vpop.f32.mrb[4].mxu0  ;;  %v497_v50 = vpack.c.bf16 %v487_v44, %v486_v35 }
  0xee   : > { %v438_v42 = vadd.f32 %v1036_v39, %v962_v16  ;;  %v429_v43 = vpop.f32.mrb[5].mxu0  ;;  %v496_v52 = vpack.c.bf16 %v485_v47, %v484_v40  ;;  %v1044_v53 = vpop.f32.mrb[4].mxu1 }
  0xef   : > { %v430_v45 = vadd.f32 %v962_v16, %v429_v43  ;;  %v1037_v46 = vpop.f32.mrb[6].mxu0  ;;  %1048 = vmatprep.mubr.msk.bf16.mxu1 %vm514_vm4, %v492_v38  ;;  %v470_v56 = vadd.f32 %v1044_v53, %v962_v16  ;;  %v461_v57 = vpop.f32.mrb[5].mxu1 }
  0xf0   : > { %v441_v48 = vadd.f32 %v1037_v46, %v962_v16  ;;  %v432_v49 = vpop.f32.mrb[7].mxu0  ;;  %1049 = vmatmul.mubr.msk.bf16.vlgmr.msra.gmra.mrb[8].mxu1 %vm514_vm4, %v493_v34  ;;  %v482_v54 = vmax.f32 %v438_v42, 0.0  ;;  %v462_v60 = vadd.f32 %v962_v16, %v461_v57  ;;  %v1045_v61 = vpop.f32.mrb[6].mxu1 }
  0xf1   : > { %v433_v51 = vadd.f32 %v962_v16, %v432_v49  ;;  %v480_v58 = vmax.f32 %v430_v45, 0.0  ;;  %v490_v63 = vmax.f32 %v470_v56, 0.0  ;;  %v473_v0 = vadd.f32 %v1045_v61, %v962_v16  ;;  %v464_v1 = vpop.f32.mrb[7].mxu1 }
  0xf2   : > { %v483_v55 = vmax.f32 %v441_v48, 0.0  ;;  %v488_v3 = vmax.f32 %v462_v60, 0.0  ;;  %v465_v4 = vadd.f32 %v962_v16, %v464_v1 }
  0xf3   : > { %v481_v59 = vmax.f32 %v433_v51, 0.0  ;;  %v491_v5 = vmax.f32 %v473_v0, 0.0 }
  0xf4   : > { %v495_v62 = vpack.c.bf16 %v483_v55, %v482_v54  ;;  %v489_v6 = vmax.f32 %v465_v4, 0.0 }
  0xf5   : > { %v494_v2 = vpack.c.bf16 %v481_v59, %v480_v58  ;;  %v499_v7 = vpack.c.bf16 %v491_v5, %v490_v63 }
  0xf6   : > { %v498_v8 = vpack.c.bf16 %v489_v6, %v488_v3 }
  0xf7   : > { %1052 = vmatprep.mubr.msk.bf16.mxu1 %vm514_vm4, %v494_v2  ;;  %v1275_v2 = vld [vmem:[%s1324_s6] ss:$0 sm:$0xff] }
  0xf8   : > { %1053 = vmatmul.mubr.msk.bf16.gmra.mrb[12].mxu1 %vm514_vm4, %v495_v62 }
  0xf9   : > { %1056 = vmatprep.mubr.msk.bf16.mxu1 %vm514_vm4, %v496_v52 }
 0x100   : > { %1057 = vmatmul.mubr.msk.bf16.gmra.mrb[16].mxu1 %vm514_vm4, %v497_v50 }
 0x101   : > { %1060 = vmatprep.mubr.msk.bf16.mxu1 %vm514_vm4, %v498_v8 }
 0x108   : > { %1061 = vmatmul.mubr.msk.bf16.gmra.mrb[20].mxu1 %vm514_vm4, %v499_v7 }
 0x1c3   : > { %v1050_v10 = vpop.f32.mrb[8].mxu1 }
 0x1c4   : > { %v586_v11 = vadd.f32 %v1050_v10, %v980_v9  ;;  %v577_v12 = vpop.f32.mrb[9].mxu1 }
 0x1c5   : > { %v578_v13 = vadd.f32 %v980_v9, %v577_v12  ;;  %v1051_v14 = vpop.f32.mrb[10].mxu1 }
 0x1c6   : > { %v589_v15 = vadd.f32 %v1051_v14, %v980_v9  ;;  %v580_v16 = vpop.f32.mrb[11].mxu1  ;;  %v642_v18 = vmax.f32 %v586_v11, 0.0 }
 0x1c7   : > { %v581_v17 = vadd.f32 %v980_v9, %v580_v16  ;;  %v640_v20 = vmax.f32 %v578_v13, 0.0 }
 0x1c8   : > { %v643_v19 = vmax.f32 %v589_v15, 0.0 }
 0x1c9   : > { %v641_v21 = vmax.f32 %v581_v17, 0.0 }
 0x1ca   : > { %v657_v22 = vpack.c.bf16 %v643_v19, %v642_v18 }
 0x1cb   : > { %v656_v23 = vpack.c.bf16 %v641_v21, %v640_v20  ;;  %v1054_v24 = vpop.f32.mrb[12].mxu1 }
 0x1cc   : > { %v602_v25 = vadd.f32 %v1054_v24, %v980_v9  ;;  %v593_v26 = vpop.f32.mrb[13].mxu1 }
 0x1cd   : > { %v594_v27 = vadd.f32 %v980_v9, %v593_v26  ;;  %v1055_v28 = vpop.f32.mrb[14].mxu1  ;;  %1066 = vmatprep.mubr.msk.bf16.mxu0 %vm672_vm5, %v656_v23 }
 0x1ce   : > { %v605_v29 = vadd.f32 %v1055_v28, %v980_v9  ;;  %v596_v30 = vpop.f32.mrb[15].mxu1  ;;  %1067 = vmatmul.mubr.msk.bf16.vlgmr.msra.gmra.mrb[8].mxu0 %vm672_vm5, %v657_v22  ;;  %v646_v32 = vmax.f32 %v602_v25, 0.0 }
 0x1cf   : > { %v597_v31 = vadd.f32 %v980_v9, %v596_v30  ;;  %v644_v34 = vmax.f32 %v594_v27, 0.0 }
 0x1d0   : > { %v647_v33 = vmax.f32 %v605_v29, 0.0 }
 0x1d1   : > { %v645_v35 = vmax.f32 %v597_v31, 0.0 }
 0x1d2   : > { %v659_v36 = vpack.c.bf16 %v647_v33, %v646_v32 }
 0x1d3   : > { %v658_v37 = vpack.c.bf16 %v645_v35, %v644_v34  ;;  %v1058_v38 = vpop.f32.mrb[16].mxu1 }
 0x1d4   : > { %v618_v39 = vadd.f32 %v1058_v38, %v980_v9  ;;  %v609_v40 = vpop.f32.mrb[17].mxu1 }
 0x1d5   : > { %v610_v41 = vadd.f32 %v980_v9, %v609_v40  ;;  %v1059_v42 = vpop.f32.mrb[18].mxu1  ;;  %1070 = vmatprep.mubr.msk.bf16.mxu0 %vm672_vm5, %v658_v37 }
 0x1d6   : > { %v621_v43 = vadd.f32 %v1059_v42, %v980_v9  ;;  %v612_v44 = vpop.f32.mrb[19].mxu1  ;;  %1071 = vmatmul.mubr.msk.bf16.gmra.mrb[12].mxu0 %vm672_vm5, %v659_v36  ;;  %v650_v46 = vmax.f32 %v618_v39, 0.0 }
 0x1d7   : > { %v613_v45 = vadd.f32 %v980_v9, %v612_v44  ;;  %v648_v48 = vmax.f32 %v610_v41, 0.0 }
 0x1d8   : > { %v651_v47 = vmax.f32 %v621_v43, 0.0 }
 0x1d9   : > { %v649_v49 = vmax.f32 %v613_v45, 0.0 }
 0x1da   : > { %v661_v50 = vpack.c.bf16 %v651_v47, %v650_v46 }
 0x1db   : > { %v660_v51 = vpack.c.bf16 %v649_v49, %v648_v48  ;;  %v1062_v52 = vpop.f32.mrb[20].mxu1 }
 0x1dc   : > { %v634_v53 = vadd.f32 %v1062_v52, %v980_v9  ;;  %v625_v54 = vpop.f32.mrb[21].mxu1 }
 0x1dd   : > { %v626_v55 = vadd.f32 %v980_v9, %v625_v54  ;;  %v1063_v56 = vpop.f32.mrb[22].mxu1  ;;  %1074 = vmatprep.mubr.msk.bf16.mxu0 %vm672_vm5, %v660_v51 }
 0x1de   : > { %v637_v57 = vadd.f32 %v1063_v56, %v980_v9  ;;  %v628_v58 = vpop.f32.mrb[23].mxu1  ;;  %1075 = vmatmul.mubr.msk.bf16.gmra.mrb[16].mxu0 %vm672_vm5, %v661_v50  ;;  %v654_v60 = vmax.f32 %v634_v53, 0.0 }
 0x1df   : > { %v629_v59 = vadd.f32 %v980_v9, %v628_v58  ;;  %v652_v62 = vmax.f32 %v626_v55, 0.0 }
 0x1e0   : > { %v655_v61 = vmax.f32 %v637_v57, 0.0 }
 0x1e1   : > { %v653_v63 = vmax.f32 %v629_v59, 0.0 }
 0x1e2   : > { %v663_v0 = vpack.c.bf16 %v655_v61, %v654_v60 }
 0x1e3   : > { %v662_v1 = vpack.c.bf16 %v653_v63, %v652_v62 }
 0x1e5   : > { %1078 = vmatprep.mubr.msk.bf16.mxu0 %vm672_vm5, %v662_v1 }
 0x1e6   : > { %1079 = vmatmul.mubr.msk.bf16.gmra.mrb[20].mxu0 %vm672_vm5, %v663_v0 }
 0x2a1   : > { %v1068_v3 = vpop.f32.mrb[8].mxu0 }
 0x2a2   : > { %v747_v4 = vadd.f32 %v1068_v3, %v1275_v2  ;;  %v738_v5 = vpop.f32.mrb[9].mxu0 }
 0x2a3   : > { %v739_v6 = vadd.f32 %v1275_v2, %v738_v5  ;;  %v1069_v7 = vpop.f32.mrb[10].mxu0 }
 0x2a4   : > { %v803_v8 = vsub.f32 0.0, %v747_v4  ;;  %v750_v9 = vadd.f32 %v1069_v7, %v1275_v2  ;;  %v741_v10 = vpop.f32.mrb[11].mxu0 }
 0x2a5   : > { %v801_v11 = vsub.f32 0.0, %v739_v6  ;;  %v742_v12 = vadd.f32 %v1275_v2, %v741_v10 }
 0x2a6   : > { %v821_v13 = vmul.f32 1.442695, %v803_v8  ;;  %v804_v14 = vsub.f32 0.0, %v750_v9 }
 0x2a7   : > { %v817_v15 = vmul.f32 1.442695, %v801_v11  ;;  %v802_v16 = vsub.f32 0.0, %v742_v12 }
 0x2a8   : > { %1104 = vpow2.f32 %v821_v13  ;;  %v823_v17 = vmul.f32 1.442695, %v804_v14 }
 0x2a9   : > { %1106 = vpow2.f32 %v817_v15  ;;  %v819_v18 = vmul.f32 1.442695, %v802_v16  ;;  %v1072_v19 = vpop.f32.mrb[12].mxu0 }
 0x2aa   : > { %1108 = vpow2.f32 %v823_v17  ;;  %v763_v20 = vadd.f32 %v1072_v19, %v1275_v2  ;;  %v754_v21 = vpop.f32.mrb[13].mxu0 }
 0x2ab   : > { %1110 = vpow2.f32 %v819_v18  ;;  %v755_v22 = vadd.f32 %v1275_v2, %v754_v21  ;;  %v1073_v23 = vpop.f32.mrb[14].mxu0 }
 0x2ac   : > { %v807_v24 = vsub.f32 0.0, %v763_v20  ;;  %v766_v25 = vadd.f32 %v1073_v23, %v1275_v2  ;;  %v757_v26 = vpop.f32.mrb[15].mxu0 }
 0x2ad   : > { %v805_v27 = vsub.f32 0.0, %v755_v22  ;;  %v758_v28 = vadd.f32 %v1275_v2, %v757_v26 }
 0x2ae   : > { %v829_v29 = vmul.f32 1.442695, %v807_v24  ;;  %v808_v30 = vsub.f32 0.0, %v766_v25 }
 0x2af   : > { %v825_v31 = vmul.f32 1.442695, %v805_v27  ;;  %v806_v32 = vsub.f32 0.0, %v758_v28 }
 0x2b0   : > { %1112 = vpow2.f32 %v829_v29  ;;  %v831_v33 = vmul.f32 1.442695, %v808_v30 }
 0x2b1   : > { %1114 = vpow2.f32 %v825_v31  ;;  %v827_v34 = vmul.f32 1.442695, %v806_v32  ;;  %v1076_v35 = vpop.f32.mrb[16].mxu0 }
 0x2b2   : > { %v1105_v36 = vpop.eup %1104  ;;  %1116 = vpow2.f32 %v831_v33  ;;  %v779_v37 = vadd.f32 %v1076_v35, %v1275_v2  ;;  %v770_v38 = vpop.f32.mrb[17].mxu0 }
 0x2b3   : > { %v1107_v39 = vpop.eup %1106  ;;  %v851_v40 = vadd.f32 1.0, %v1105_v36  ;;  %1118 = vpow2.f32 %v827_v34  ;;  %v771_v41 = vadd.f32 %v1275_v2, %v770_v38  ;;  %v1077_v42 = vpop.f32.mrb[18].mxu0 }
 0x2b4   : > { %v1109_v43 = vpop.eup %1108  ;;  %v849_v44 = vadd.f32 1.0, %v1107_v39  ;;  %v811_v45 = vsub.f32 0.0, %v779_v37  ;;  %v782_v46 = vadd.f32 %v1077_v42, %v1275_v2  ;;  %v773_v47 = vpop.f32.mrb[19].mxu0 }
 0x2b5   : > { %v1111_v48 = vpop.eup %1110  ;;  %1120 = vrcp.f32 %v851_v40  ;;  %v852_v49 = vadd.f32 1.0, %v1109_v43  ;;  %v809_v50 = vsub.f32 0.0, %v771_v41  ;;  %v774_v51 = vadd.f32 %v1275_v2, %v773_v47 }
 0x2b6   : > { %1122 = vrcp.f32 %v849_v44  ;;  %v850_v52 = vadd.f32 1.0, %v1111_v48  ;;  %v837_v53 = vmul.f32 1.442695, %v811_v45  ;;  %v812_v54 = vsub.f32 0.0, %v782_v46 }
 0x2b7   : > { %1124 = vrcp.f32 %v852_v49  ;;  %v833_v55 = vmul.f32 1.442695, %v809_v50  ;;  %v810_v56 = vsub.f32 0.0, %v774_v51 }
 0x2b8   : > { %1126 = vrcp.f32 %v850_v52  ;;  %v839_v57 = vmul.f32 1.442695, %v812_v54 }
 0x2b9   : > { %1128 = vpow2.f32 %v837_v53  ;;  %v835_v58 = vmul.f32 1.442695, %v810_v56  ;;  %v1080_v59 = vpop.f32.mrb[20].mxu0 }
 0x2ba   : > { %v1113_v60 = vpop.eup %1112  ;;  %1130 = vpow2.f32 %v833_v55  ;;  %v795_v61 = vadd.f32 %v1080_v59, %v1275_v2  ;;  %v786_v62 = vpop.f32.mrb[21].mxu0 }
 0x2bb   : > { %v1115_v63 = vpop.eup %1114  ;;  %v855_v0 = vadd.f32 1.0, %v1113_v60  ;;  %1132 = vpow2.f32 %v839_v57  ;;  %v787_v1 = vadd.f32 %v1275_v2, %v786_v62  ;;  %v1081_v3 = vpop.f32.mrb[22].mxu0 }
 0x2bc   : > { %v1117_v4 = vpop.eup %1116  ;;  %v853_v5 = vadd.f32 1.0, %v1115_v63  ;;  %1134 = vpow2.f32 %v835_v58  ;;  %v815_v6 = vsub.f32 0.0, %v795_v61  ;;  %v798_v7 = vadd.f32 %v1081_v3, %v1275_v2  ;;  %v789_v8 = vpop.f32.mrb[23].mxu0 }
 0x2bd   : > { %v1119_v9 = vpop.eup %1118  ;;  %1136 = vrcp.f32 %v855_v0  ;;  %v856_v10 = vadd.f32 1.0, %v1117_v4  ;;  %v813_v11 = vsub.f32 0.0, %v787_v1  ;;  %v790_v12 = vadd.f32 %v1275_v2, %v789_v8 }
 0x2be   : > { %1138 = vrcp.f32 %v853_v5  ;;  %v854_v13 = vadd.f32 1.0, %v1119_v9  ;;  %v845_v14 = vmul.f32 1.442695, %v815_v6  ;;  %v816_v15 = vsub.f32 0.0, %v798_v7 }
 0x2bf   : > { %v1121_v16 = vpop.eup %1120  ;;  %1140 = vrcp.f32 %v856_v10  ;;  %v841_v17 = vmul.f32 1.442695, %v813_v11  ;;  %v814_v18 = vsub.f32 0.0, %v790_v12 }
 0x2c0   : > { %v1123_v19 = vpop.eup %1122  ;;  %883 = vst [vmem:[%s1296_s23 + $0x10] sm:$0xff] %v1121_v16  ;;  %1142 = vrcp.f32 %v854_v13  ;;  %v847_v20 = vmul.f32 1.442695, %v816_v15 }
 0x2c1   : > { %v1125_v21 = vpop.eup %1124  ;;  %881 = vst [vmem:[%s1296_s23] sm:$0xff] %v1123_v19  ;;  %1144 = vpow2.f32 %v845_v14  ;;  %v843_v22 = vmul.f32 1.442695, %v814_v18 }
 0x2c2   : > { %v1127_v23 = vpop.eup %1126  ;;  %884 = vst [vmem:[%s1296_s23 + $0x18] sm:$0xff] %v1125_v21  ;;  %1146 = vpow2.f32 %v841_v17 }
 0x2c3   : > { %v1129_v2 = vpop.eup %1128  ;;  %882 = vst [vmem:[%s1296_s23 + $0x8] sm:$0xff] %v1127_v23  ;;  %1148 = vpow2.f32 %v847_v20 }
 0x2c4   : > { %v1131_v24 = vpop.eup %1130  ;;  %v859_v25 = vadd.f32 1.0, %v1129_v2  ;;  %1150 = vpow2.f32 %v843_v22 }
 0x2c5   : > { %v1133_v26 = vpop.eup %1132  ;;  %v857_v27 = vadd.f32 1.0, %v1131_v24 }
 0x2c6   : > { %v1135_v28 = vpop.eup %1134  ;;  %1152 = vrcp.f32 %v859_v25  ;;  %v860_v29 = vadd.f32 1.0, %v1133_v26 }
 0x2c7   : > { %v1137_v30 = vpop.eup %1136  ;;  %1154 = vrcp.f32 %v857_v27  ;;  %v858_v31 = vadd.f32 1.0, %v1135_v28 }
 0x2c8   : > { %v1139_v32 = vpop.eup %1138  ;;  %887 = vst [vmem:[%s1296_s23 + $0x30] sm:$0xff] %v1137_v30  ;;  %1156 = vrcp.f32 %v860_v29 }
 0x2c9   : > { %v1141_v33 = vpop.eup %1140  ;;  %885 = vst [vmem:[%s1296_s23 + $0x20] sm:$0xff] %v1139_v32  ;;  %1158 = vrcp.f32 %v858_v31 }
 0x2ca   : > { %v1143_v34 = vpop.eup %1142  ;;  %888 = vst [vmem:[%s1296_s23 + $0x38] sm:$0xff] %v1141_v33 }
 0x2cb   : > { %v1145_v35 = vpop.eup %1144  ;;  %886 = vst [vmem:[%s1296_s23 + $0x28] sm:$0xff] %v1143_v34 }
 0x2cc   : > { %v1147_v36 = vpop.eup %1146  ;;  %v863_v37 = vadd.f32 1.0, %v1145_v35 }
 0x2cd   : > { %v1149_v38 = vpop.eup %1148  ;;  %v861_v39 = vadd.f32 1.0, %v1147_v36 }
 0x2ce   : > { %v1151_v40 = vpop.eup %1150  ;;  %1160 = vrcp.f32 %v863_v37  ;;  %v864_v41 = vadd.f32 1.0, %v1149_v38 }
 0x2cf   : > { %1162 = vrcp.f32 %v861_v39  ;;  %v862_v42 = vadd.f32 1.0, %v1151_v40 }
 0x2d0   : > { %v1153_v43 = vpop.eup %1152  ;;  %1164 = vrcp.f32 %v864_v41 }
 0x2d1   : > { %v1155_v44 = vpop.eup %1154  ;;  %891 = vst [vmem:[%s1296_s23 + $0x50] sm:$0xff] %v1153_v43  ;;  %1166 = vrcp.f32 %v862_v42 }
 0x2d2   : > { %v1157_v45 = vpop.eup %1156  ;;  %889 = vst [vmem:[%s1296_s23 + $0x40] sm:$0xff] %v1155_v44 }
 0x2d3   : > { %v1159_v46 = vpop.eup %1158  ;;  %892 = vst [vmem:[%s1296_s23 + $0x58] sm:$0xff] %v1157_v45 }
 0x2d4   : > { %890 = vst [vmem:[%s1296_s23 + $0x48] sm:$0xff] %v1159_v46 }
 0x2d8   : > { %v1161_v47 = vpop.eup %1160 }
 0x2d9   : > { %v1163_v48 = vpop.eup %1162  ;;  %895 = vst [vmem:[%s1296_s23 + $0x70] sm:$0xff] %v1161_v47 }
 0x2da   : > { %v1165_v49 = vpop.eup %1164  ;;  %893 = vst [vmem:[%s1296_s23 + $0x60] sm:$0xff] %v1163_v48 }
 0x2db   : > { %v1167_v50 = vpop.eup %1166  ;;  %896 = vst [vmem:[%s1296_s23 + $0x78] sm:$0xff] %v1165_v49 }
 0x2dc   : > { %894 = vst [vmem:[%s1296_s23 + $0x68] sm:$0xff] %v1167_v50 }
 0x2dd PF: > { %s17_s24 = sadd.s32 1, %s1174_s24  }
 0x2de   : > { %p14_p4 = scmp.ge.s32.totalorder %s17_s24, 4  }
 0x2e0   :  { %16 = sbr.rel (!%p14_p4) target bundleno = 1 (0x1), region = 78 }

</bundles_post_ra>
